<compile_context>
chip_gen: v7x
topology: tpu7x:2x2x1
jax: 0.10.0
libtpu: 0.0.40
codegen_flags: <defaults>
</compile_context>

<pallas_src>
import jax
import jax.numpy as jnp
from jax.experimental import pallas as pl
from jax.experimental.pallas import tpu as pltpu


# --------------------------------------------------------------------------
# small helpers
# --------------------------------------------------------------------------
def _round_up(x, m):
    return ((x + m - 1) // m) * m


def _pad2(m, rows, cols):
    return jnp.pad(m, ((0, rows - m.shape[0]), (0, cols - m.shape[1])))


def _pick_tiles(n_nodes, tile_m=256, max_k_slab=4096):
    """Row tile >= 256; k tile = full padded node count when it fits (one long
    contraction per row tile), else the largest 128-multiple <= max_k_slab that
    divides n_pad.  n_pad is padded up to a multiple of tm."""
    tm = max(256, _round_up(tile_m, 128))
    n_pad = _round_up(max(n_nodes, tm), tm)
    if n_pad <= max_k_slab:
        return n_pad, tm, n_pad
    tk = max(128, (min(max_k_slab, n_pad) // 128) * 128)
    while n_pad % tk:
        tk -= 128
    return n_pad, tm, tk


def _vmem_limit_bytes():
    """Scoped-VMEM cap from the actual chip (64 MiB v7x, 128 MiB v5e/v6e)."""
    try:
        cap = pltpu.get_tpu_info().vmem_capacity_bytes
    except Exception:                      # non-TPU trace / older jax
        cap = 64 * 1024 * 1024
    return int(min(0.75 * cap, 100 * 1024 * 1024))


# --------------------------------------------------------------------------
# Pallas kernels
# --------------------------------------------------------------------------
def gcn_layer1_kernel(a_ref, xw_ref, dinv_ref, b1_ref, h1_ref, acc_ref):
    """acc(i) += (A+I)[i,k] @ (D^-1/2 X W1);  last k: h1 = relu(D^-1/2 acc + b1)."""
    k = pl.program_id(1)
    tk = a_ref.shape[1]

    @pl.when(k == 0)
    def _():
        acc_ref[...] = jnp.zeros_like(acc_ref)

    off = pl.multiple_of(k * tk, 128)
    acc_ref[...] += jnp.dot(a_ref[...].astype(jnp.bfloat16),     # int8 -> bf16
                            xw_ref[pl.ds(off, tk), :],            # resident slab
                            preferred_element_type=jnp.float32)

    @pl.when(k == pl.num_programs(1) - 1)
    def _():
        h = dinv_ref[...] * acc_ref[...] + b1_ref[...]
        h1_ref[...] = jnp.maximum(h, 0.0).astype(h1_ref.dtype)


def gcn_layer2_pool_kernel(a_ref, hw_ref, dinv_ref, b2_ref, p_ref,
                           pool_ref, acc_ref):
    """acc(i) += (A+I)[i,k] @ (D^-1/2 h1 W2);
       last k: h2 = relu(D^-1/2 acc + b2);  pooled_partial[i] = P[:, i-tile] @ h2."""
    k = pl.program_id(1)
    tk = a_ref.shape[1]

    @pl.when(k == 0)
    def _():
        acc_ref[...] = jnp.zeros_like(acc_ref)

    off = pl.multiple_of(k * tk, 128)
    acc_ref[...] += jnp.dot(a_ref[...].astype(jnp.bfloat16),
                            hw_ref[pl.ds(off, tk), :],
                            preferred_element_type=jnp.float32)

    @pl.when(k == pl.num_programs(1) - 1)
    def _():
        h2 = jnp.maximum(dinv_ref[...] * acc_ref[...] + b2_ref[...], 0.0)
        # mean-pool contribution of this node-row tile; h2 never goes to HBM
        pool_ref[0] = jnp.dot(p_ref[...], h2, preferred_element_type=jnp.float32)


# --------------------------------------------------------------------------
# plain-JAX glue (graph structure -> dense operators)
# --------------------------------------------------------------------------
def build_adjacency_and_dinv(edge_index, num_nodes):
    """Integer-valued (A + I) (PyG convention: src -> dst messages) and D^-1/2."""
    src, dst = edge_index[0], edge_index[1]
    adj = jnp.zeros((num_nodes, num_nodes), jnp.float32)
    adj = adj.at[dst, src].add(1.0)
    adj = adj + jnp.eye(num_nodes, dtype=jnp.float32)
    deg = adj.sum(axis=1)
    dinv = jnp.where(deg > 0, 1.0 / jnp.sqrt(deg), 0.0)
    return adj, dinv


def build_pool_matrix(batch, num_graphs, num_nodes):
    """P[g, n] = 1/|graph g| if node n belongs to graph g else 0."""
    onehot = (batch[None, :] == jnp.arange(num_graphs)[:, None]).astype(jnp.float32)
    counts = onehot.sum(axis=1, keepdims=True)
    return onehot / jnp.maximum(counts, 1.0)


# --------------------------------------------------------------------------
# forward pass
# --------------------------------------------------------------------------
def gnn_forward(x, edge_index, batch, params, num_graphs, *,
                tile_m=256, max_k_slab=4096):
    x = x.astype(jnp.float32)
    n_nodes, _ = x.shape
    hidden = params["w1"].shape[1]

    h_pad = _round_up(max(hidden, 128), 128)
    g_pad = _round_up(max(num_graphs, 8), 8)
    n_pad, tm, tk = _pick_tiles(n_nodes, tile_m, max_k_slab)
    grid = (n_pad // tm, n_pad // tk)
    grid_i = n_pad // tm

    adj, dinv = build_adjacency_and_dinv(edge_index, n_nodes)
    p = build_pool_matrix(batch, num_graphs, n_nodes)

    # dominant HBM stream: exact small-integer (A+I) counts in int8 (1 B/entry)
    a_i8 = _pad2(adj, n_pad, n_pad).astype(jnp.int8)
    p_pad = _pad2(p, g_pad, n_pad)                                    # f32
    dinv_pad = jnp.pad(dinv, (0, n_pad - n_nodes)).reshape(n_pad, 1)  # 0 on pad rows

    # fold W1 and the right D^-1/2 factor into the streamed features (unpadded)
    xw1s = dinv[:, None] * (x @ params["w1"])
    xw1s_pad = _pad2(xw1s, n_pad, h_pad).astype(jnp.bfloat16)

    b1_pad = _pad2(params["b1"].reshape(1, hidden), 1, h_pad)
    b2_pad = _pad2(params["b2"].reshape(1, hidden), 1, h_pad)
    w2_pad = _pad2(params["w2"], h_pad, h_pad)                        # f32

    vmem_limit = _vmem_limit_bytes()

    # ---------------- layer 1: h1 = relu(A_norm @ (X W1) + b1) ----------------
    cost1 = pl.CostEstimate(
        flops=int(2 * n_pad * n_pad * h_pad),
        transcendentals=0,
        bytes_accessed=int(n_pad * n_pad              # A (int8), streamed once
                           + 2 * n_pad * h_pad        # resident feature slab (bf16)
                           + 4 * n_pad + 4 * h_pad    # dinv, b1
                           + 2 * n_pad * h_pad),      # h1 out (bf16)
    )
    h1 = pl.pallas_call(
        gcn_layer1_kernel,
        out_shape=jax.ShapeDtypeStruct((n_pad, h_pad), jnp.bfloat16),
        grid_spec=pltpu.PrefetchScalarGridSpec(
            num_scalar_prefetch=0,
            grid=grid,
            in_specs=[
                pl.BlockSpec((tm, tk), lambda i, k: (i, k)),        # (A+I) int8 tile
                pl.BlockSpec((n_pad, h_pad), lambda i, k: (0, 0)),  # resident X@W1 slab
                pl.BlockSpec((tm, 1), lambda i, k: (i, 0)),         # D^-1/2 rows
                pl.BlockSpec((1, h_pad), lambda i, k: (0, 0)),      # b1
            ],
            out_specs=pl.BlockSpec((tm, h_pad), lambda i, k: (i, 0)),
            scratch_shapes=[pltpu.VMEM((tm, h_pad), jnp.float32)],
        ),
        compiler_params=pltpu.CompilerParams(
            dimension_semantics=("parallel", "arbitrary"),
            vmem_limit_bytes=vmem_limit,
        ),
        cost_estimate=cost1,
    )(a_i8, xw1s_pad, dinv_pad, b1_pad)

    # fold W2 and the right D^-1/2 factor into layer-2's streamed operand (XLA,
    # f32).  dinv_pad is 0 on padded rows, so padded rows are exactly 0.
    h1w2s = (dinv_pad * (h1.astype(jnp.float32) @ w2_pad)).astype(jnp.bfloat16)

    # ---------------- layer 2 + per-row-tile global_mean_pool partials --------
    cost2 = pl.CostEstimate(
        flops=int(2 * n_pad * n_pad * h_pad + 2 * g_pad * n_pad * h_pad),
        transcendentals=0,
        bytes_accessed=int(n_pad * n_pad + 2 * n_pad * h_pad
                           + 4 * g_pad * n_pad + 4 * n_pad + 4 * h_pad
                           + 4 * grid_i * g_pad * h_pad),
    )
    partials = pl.pallas_call(
        gcn_layer2_pool_kernel,
        out_shape=jax.ShapeDtypeStruct((grid_i, g_pad, h_pad), jnp.float32),
        grid_spec=pltpu.PrefetchScalarGridSpec(
            num_scalar_prefetch=0,
            grid=grid,
            in_specs=[
                pl.BlockSpec((tm, tk), lambda i, k: (i, k)),        # (A+I) int8 tile
                pl.BlockSpec((n_pad, h_pad), lambda i, k: (0, 0)),  # resident h1@W2 slab
                pl.BlockSpec((tm, 1), lambda i, k: (i, 0)),         # D^-1/2 rows
                pl.BlockSpec((1, h_pad), lambda i, k: (0, 0)),      # b2
                pl.BlockSpec((g_pad, tm), lambda i, k: (0, i)),     # P column slab
            ],
            out_specs=pl.BlockSpec((1, g_pad, h_pad), lambda i, k: (i, 0, 0)),
            scratch_shapes=[pltpu.VMEM((tm, h_pad), jnp.float32)],
        ),
        compiler_params=pltpu.CompilerParams(
            dimension_semantics=("parallel", "arbitrary"),
            vmem_limit_bytes=vmem_limit,
        ),
        cost_estimate=cost2,
    )(a_i8, h1w2s, dinv_pad, b2_pad, p_pad)

    # tiny reductions / final Linear stay in XLA at unpadded size
    pooled = partials.sum(axis=0)[:num_graphs, :hidden]
    return pooled @ params["wfc"] + params["bfc"]


# --------------------------------------------------------------------------
# pure-JAX reference (f32) and params
# --------------------------------------------------------------------------
def reference_forward(x, edge_index, batch, params, num_graphs):
    x = x.astype(jnp.float32)
    adj, dinv = build_adjacency_and_dinv(edge_index, x.shape[0])
    a = dinv[:, None] * adj * dinv[None, :]
    p = build_pool_matrix(batch, num_graphs, x.shape[0])
    h1 = jnp.maximum(a @ (x @ params["w1"]) + params["b1"], 0.0)
    h2 = jnp.maximum(a @ (h1 @ params["w2"]) + params["b2"], 0.0)
    pooled = p @ h2
    return pooled @ params["wfc"] + params["bfc"]


def init_params(key, in_channels, hidden_channels, out_channels):
    k1, k2, k3 = jax.random.split(key, 3)

    def glorot(k, fan_in, fan_out):
        limit = jnp.sqrt(6.0 / (fan_in + fan_out))
        return jax.random.uniform(k, (fan_in, fan_out), jnp.float32,
                                  -limit, limit)

    return {
        "w1": glorot(k1, in_channels, hidden_channels),
        "b1": jnp.zeros((hidden_channels,), jnp.float32),
        "w2": glorot(k2, hidden_channels, hidden_channels),
        "b2": jnp.zeros((hidden_channels,), jnp.float32),
        # torch Linear stores [out, in]; we keep the transposed [in, out]
        "wfc": glorot(k3, hidden_channels, out_channels),
        "bfc": jnp.zeros((out_channels,), jnp.float32),
    }


def _check(out, ref, tol=3e-2):
    err = float(jnp.max(jnp.abs(out - ref)) / (jnp.max(jnp.abs(ref)) + 1e-6))
    assert err < tol, f"relative error {err} exceeds {tol}"


# --------------------------------------------------------------------------
# main
# --------------------------------------------------------------------------
if __name__ == "__main__":
    key = jax.random.PRNGKey(0)
    kx, kp, ke1, ke2, kx2 = jax.random.split(key, 5)

    in_channels, hidden_channels, out_channels = 8, 32, 4
    params = init_params(kp, in_channels, hidden_channels, out_channels)

    # ---- test 1: tiny batch (2 ring graphs, 16 nodes), single-tile grid ----
    num_nodes, num_graphs = 16, 2
    x = jax.random.normal(kx, (num_nodes, in_channels), jnp.float32)

    def ring_edges(lo, hi):
        src, dst = [], []
        for i in range(lo, hi):
            j = lo + ((i - lo + 1) % (hi - lo))
            src += [i, j]
            dst += [j, i]
        return src, dst

    s0, d0 = ring_edges(0, 8)
    s1, d1 = ring_edges(8, 16)
    edge_index = jnp.array([s0 + s1, d0 + d1], dtype=jnp.int32)
    batch = jnp.array([0] * 8 + [1] * 8, dtype=jnp.int32)

    out = gnn_forward(x, edge_index, batch, params, num_graphs)
    out = jax.block_until_ready(out)
    ref = reference_forward(x, edge_index, batch, params, num_graphs)
    assert out.shape == (num_graphs, out_channels)
    _check(out, ref)     # bf16 streamed operands -> relaxed tolerance vs f32 ref

    # ---- test 2: 3 graphs, 600 nodes; max_k_slab=256 forces a (3, 3) grid ----
    num_nodes2, num_graphs2 = 600, 3
    sizes = [250, 200, 150]
    x2 = jax.random.normal(kx2, (num_nodes2, in_channels), jnp.float32)
    batch2 = jnp.array(sum(([g] * s for g, s in enumerate(sizes)), []),
                       dtype=jnp.int32)
    # random intra-graph undirected edges
    lo = 0
    src_list, dst_list = [], []
    for g, sz in enumerate(sizes):
        kg1, kg2 = jax.random.split(jax.random.fold_in(ke1, g))
        s = jax.random.randint(kg1, (3 * sz,), lo, lo + sz)
        d = jax.random.randint(kg2, (3 * sz,), lo, lo + sz)
        src_list += [s, d]
        dst_list += [d, s]
        lo += sz
    edge_index2 = jnp.stack([jnp.concatenate(src_list),
                             jnp.concatenate(dst_list)]).astype(jnp.int32)

    out2 = gnn_forward(x2, edge_index2, batch2, params, num_graphs2,
                       tile_m=256, max_k_slab=256)
    out2 = jax.block_until_ready(out2)
    ref2 = reference_forward(x2, edge_index2, batch2, params, num_graphs2)
    assert out2.shape == (num_graphs2, out_channels)
    _check(out2, ref2)

    print("KERNEL_OK")
</pallas_src>

<mosaic_0001>
module attributes {stable_mosaic.version = 11 : i64} {
  func.func @gcn_layer1_kernel(%arg0: i32, %arg1: i32, %arg2: memref<256x256xi8, #tpu.memory_space<vmem>>, %arg3: memref<256x128xbf16, #tpu.memory_space<vmem>>, %arg4: memref<256x1xf32, #tpu.memory_space<vmem>>, %arg5: memref<1x128xf32, #tpu.memory_space<vmem>>, %arg6: memref<256x128xbf16, #tpu.memory_space<vmem>>, %arg7: memref<256x128xf32, #tpu.memory_space<vmem>>) attributes {dimension_semantics = [#tpu.dimension_semantics<parallel>, #tpu.dimension_semantics<arbitrary>], iteration_bounds = array<i64: 1, 1>, scalar_prefetch = 0 : i64, scratch_operands = 1 : i64, tpu.core_type = #tpu.core_type<tc>, window_params = [{transform_indices = @transform_0, window_bounds = array<i64: 256, 256>}, {pipeline_mode = #tpu.pipeline_mode<synchronous>, transform_indices = @transform_1, window_bounds = array<i64: 256, 128>}, {transform_indices = @transform_2, window_bounds = array<i64: 256, 1>}, {pipeline_mode = #tpu.pipeline_mode<synchronous>, transform_indices = @transform_3, window_bounds = array<i64: 1, 128>}, {transform_indices = @transform_4, window_bounds = array<i64: 256, 128>}]} {
    %c0_i32 = arith.constant 0 : i32
    %0 = arith.cmpi eq, %arg1, %c0_i32 : i32
    %1 = arith.extui %0 : i1 to i32
    %c0_i32_0 = arith.constant 0 : i32
    %2 = arith.cmpi ne, %1, %c0_i32_0 : i32
    scf.if %2 {
      %cst_9 = arith.constant 0.000000e+00 : f32
      %16 = vector.broadcast %cst_9 : f32 to vector<256x128xf32>
      %c0_10 = arith.constant 0 : index
      %c0_11 = arith.constant 0 : index
      %17 = vector.load %arg7[%c0_10, %c0_11] : memref<256x128xf32, #tpu.memory_space<vmem>>, vector<256x128xf32>
      tpu.vector_store %arg7[%c0_10, %c0_11], %16 {strides = array<i32>} : memref<256x128xf32, #tpu.memory_space<vmem>>, vector<256x128xf32>,
    } else {
    }
    %c256_i32 = arith.constant 256 : i32
    %3 = arith.muli %arg1, %c256_i32 : i32
    %4 = tpu.assume_multiple %3, 128 : i32
    %c0 = arith.constant 0 : index
    %c0_1 = arith.constant 0 : index
    %5 = vector.load %arg7[%c0, %c0_1] : memref<256x128xf32, #tpu.memory_space<vmem>>, vector<256x128xf32>
    %c0_2 = arith.constant 0 : index
    %c0_3 = arith.constant 0 : index
    %6 = vector.load %arg2[%c0_2, %c0_3] : memref<256x256xi8, #tpu.memory_space<vmem>>, vector<256x256xi8>
    %7 = arith.sitofp %6 : vector<256x256xi8> to vector<256x256xbf16>
    %8 = arith.index_cast %4 : i32 to index
    %c0_4 = arith.constant 0 : index
    %9 = vector.load %arg3[%8, %c0_4] : memref<256x128xbf16, #tpu.memory_space<vmem>>, vector<256x128xbf16>
    %cst = arith.constant dense<0.000000e+00> : vector<256x128xf32>
    %10 = tpu.matmul %7, %9, %cst {dimension_numbers = #tpu.dot_dimension_numbers<[1], [0], [0], [1], [0, 0, 1, 1], [], []>} : vector<256x256xbf16>, vector<256x128xbf16>, vector<256x128xf32> -> vector<256x128xf32>
    %11 = arith.addf %5, %10 : vector<256x128xf32>
    %c0_5 = arith.constant 0 : index
    %c0_6 = arith.constant 0 : index
    %12 = vector.load %arg7[%c0_5, %c0_6] : memref<256x128xf32, #tpu.memory_space<vmem>>, vector<256x128xf32>
    tpu.vector_store %arg7[%c0_5, %c0_6], %11 {strides = array<i32>} : memref<256x128xf32, #tpu.memory_space<vmem>>, vector<256x128xf32>,
    %c0_i32_7 = arith.constant 0 : i32
    %13 = arith.cmpi eq, %arg1, %c0_i32_7 : i32
    %14 = arith.extui %13 : i1 to i32
    %c0_i32_8 = arith.constant 0 : i32
    %15 = arith.cmpi ne, %14, %c0_i32_8 : i32
    scf.if %15 {
      %c0_9 = arith.constant 0 : index
      %c0_10 = arith.constant 0 : index
      %16 = vector.load %arg4[%c0_9, %c0_10] : memref<256x1xf32, #tpu.memory_space<vmem>>, vector<256x1xf32>
      %c0_11 = arith.constant 0 : index
      %c0_12 = arith.constant 0 : index
      %17 = vector.load %arg7[%c0_11, %c0_12] : memref<256x128xf32, #tpu.memory_space<vmem>>, vector<256x128xf32>
      %18 = vector.broadcast %16 : vector<256x1xf32> to vector<256x128xf32>
      %19 = arith.mulf %18, %17 : vector<256x128xf32>
      %c0_13 = arith.constant 0 : index
      %c0_14 = arith.constant 0 : index
      %20 = vector.load %arg5[%c0_13, %c0_14] : memref<1x128xf32, #tpu.memory_space<vmem>>, vector<1x128xf32>
      %21 = vector.broadcast %20 : vector<1x128xf32> to vector<256x128xf32>
      %22 = arith.addf %19, %21 : vector<256x128xf32>
      %cst_15 = arith.constant 0.000000e+00 : f32
      %23 = vector.broadcast %cst_15 : f32 to vector<256x128xf32>
      %24 = arith.maximumf %22, %23 : vector<256x128xf32>
      %25 = arith.truncf %24 : vector<256x128xf32> to vector<256x128xbf16>
      %c0_16 = arith.constant 0 : index
      %c0_17 = arith.constant 0 : index
      %26 = vector.load %arg6[%c0_16, %c0_17] : memref<256x128xbf16, #tpu.memory_space<vmem>>, vector<256x128xbf16>
      tpu.vector_store %arg6[%c0_16, %c0_17], %25 {strides = array<i32>} : memref<256x128xbf16, #tpu.memory_space<vmem>>, vector<256x128xbf16>,
    } else {
    }
    return
  }
  func.func @transform_0(%arg0: i32, %arg1: i32) -> (i32, i32) {
    %c0_i32 = arith.constant 0 : i32
    return %arg0, %arg1 : i32, i32
  }
  func.func @transform_1(%arg0: i32, %arg1: i32) -> (i32, i32) {
    %c0_i32 = arith.constant 0 : i32
    %c0_i32_0 = arith.constant 0 : i32
    %c0_i32_1 = arith.constant 0 : i32
    return %c0_i32, %c0_i32_0 : i32, i32
  }
  func.func @transform_2(%arg0: i32, %arg1: i32) -> (i32, i32) {
    %c0_i32 = arith.constant 0 : i32
    %c0_i32_0 = arith.constant 0 : i32
    return %arg0, %c0_i32 : i32, i32
  }
  func.func @transform_3(%arg0: i32, %arg1: i32) -> (i32, i32) {
    %c0_i32 = arith.constant 0 : i32
    %c0_i32_0 = arith.constant 0 : i32
    %c0_i32_1 = arith.constant 0 : i32
    return %c0_i32, %c0_i32_0 : i32, i32
  }
  func.func @transform_4(%arg0: i32, %arg1: i32) -> (i32, i32) {
    %c0_i32 = arith.constant 0 : i32
    %c0_i32_0 = arith.constant 0 : i32
    return %arg0, %c0_i32 : i32, i32
  }
}

</mosaic_0001>

<bundles_post_ra>
// kernel: tpu_custom_call.1
= control target key start
LH: loop header
LB: loop body
LE: loop exit
PB: predicated region body
PF: predicated region fallthrough
CT: control target
= control target key end

     0   :  { %v1351_v2 = vmov 0   ;;  %s1660_s0 = inlined_call_operand.vmem [shape: s8[256,256], index: 0, kind: input, shape index: {}]   ;;  %s1661_s1 = inlined_call_operand.vmem [shape: bf16[256,128], index: 1, kind: input, shape index: {}]   ;;  %s1662_s2 = inlined_call_operand.vmem [shape: f32[256,1], index: 2, kind: input, shape index: {}]   ;;  %s1663_s3 = inlined_call_operand.vmem [shape: f32[1,128], index: 3, kind: input, shape index: {}]   ;;  %s1664_s4 = inlined_call_operand.hbm [shape: bf16[256,128], index: 4, kind: output, shape index: {}]  }
   0x1   :  { %v1311_v0 = vld [vmem:[%s1661_s1 + $0x40] sm:$0xff]   ;;  %1310 = vset.pattern.permute.xlu1 %v1351_v2  ;;  %1309 = vset.pattern.permute.xlu0 %v1351_v2  ;;  %v1313_v3 = vld [vmem:[%s1661_s1 + $0x48] sm:$0xff]   ;;  %v1315_v5 = vld [vmem:[%s1661_s1 + $0x50] sm:$0xff]  }
   0x2   :  { %v1312_v1 = vld [vmem:[%s1661_s1] sm:$0xff]   ;;  %1177 = vmatprep.subr.bf16.mxu0 %v1311_v0  ;;  %1289 = vmatprep.subr.bf16.mxu1 %v1311_v0  ;;  %v1314_v4 = vld [vmem:[%s1661_s1 + $0x8] sm:$0xff]   ;;  %v1316_v6 = vld [vmem:[%s1661_s1 + $0x10] sm:$0xff]  }
   0x3   :  { %1178 = vmatpush3.bf16.msra.mxu0 %v1312_v1  ;;  %1297 = vmatpush3.bf16.msra.mxu1 %v1312_v1  ;;  %v1317_v7 = vld [vmem:[%s1661_s1 + $0x58] sm:$0xff]   ;;  %v1319_v9 = vld [vmem:[%s1661_s1 + $0x60] sm:$0xff]   ;;  %v1321_v11 = vld [vmem:[%s1661_s1 + $0x68] sm:$0xff]  }
   0x4   :  { %1179 = vmatprep.subr.bf16.mxu0 %v1313_v3  ;;  %1290 = vmatprep.subr.bf16.mxu1 %v1313_v3  ;;  %v1318_v8 = vld [vmem:[%s1661_s1 + $0x18] sm:$0xff]   ;;  %v1320_v10 = vld [vmem:[%s1661_s1 + $0x20] sm:$0xff]   ;;  %v89_v12 = vld [vmem:[%s1660_s0 + $0x8] sm:$0xff] }
   0x5   :  { %v97_v13 = vld [vmem:[%s1660_s0 + $0x48] sm:$0xff]  ;;  %v105_v14 = vunpack.c.l.s8.bf16 %v89_v12  ;;  %v498_v17 = vld [vmem:[%s1662_s2 + $0x10] sm:$0xff]  ;;  %v496_v18 = vld [vmem:[%s1662_s2] sm:$0xff]  ;;  %v107_v31 = vunpack.c.h.s8.bf16 %v89_v12 }
   0x6   :  { %v121_v15 = vunpack.c.l.s8.bf16 %v97_v13  ;;  %v1322_v16 = vld [vmem:[%s1661_s1 + $0x28] sm:$0xff]   ;;  %v1323_v19 = vld [vmem:[%s1661_s1 + $0x70] sm:$0xff]   ;;  %572 = vperm.xlu1 %1310, %v498_v17   ;;  %562 = vperm.xlu0 %1309, %v496_v18   ;;  %v499_v21 = vld [vmem:[%s1662_s2 + $0x18] sm:$0xff]  ;;  %v123_v32 = vunpack.c.h.s8.bf16 %v97_v13 }
   0x7   :  { %1180 = vmatpush3.bf16.msra.mxu0 %v1314_v4  ;;  %1298 = vmatpush3.bf16.msra.mxu1 %v1314_v4  ;;  %v1324_v20 = vld [vmem:[%s1661_s1 + $0x30] sm:$0xff]   ;;  %v497_v22 = vld [vmem:[%s1662_s2 + $0x8] sm:$0xff]  ;;  %v1325_v23 = vld [vmem:[%s1661_s1 + $0x78] sm:$0xff]  }
   0x8   :  { %1181 = vmatprep.subr.bf16.mxu0 %v1315_v5  ;;  %1291 = vmatprep.subr.bf16.mxu1 %v1315_v5  ;;  %v1326_v24 = vld [vmem:[%s1661_s1 + $0x38] sm:$0xff]   ;;  %v88_v25 = vld [vmem:[%s1660_s0] sm:$0xff]  ;;  %v501_v27 = vld [vmem:[%s1662_s2 + $0x28] sm:$0xff] }
   0x9   :  { %300 = vmatprep.mubr.bf16.mxu0 %v105_v14  ;;  %364 = vmatprep.mubr.bf16.mxu1 %v121_v15  ;;  %v96_v26 = vld [vmem:[%s1660_s0 + $0x40] sm:$0xff]  ;;  %v104_v29 = vunpack.c.l.s8.bf16 %v88_v25 }
   0xa   :  { %577 = vperm.xlu1 %1310, %v499_v21   ;;  %567 = vperm.xlu0 %1309, %v497_v22   ;;  %v500_v28 = vld [vmem:[%s1662_s2 + $0x20] sm:$0xff]  ;;  %v120_v30 = vunpack.c.l.s8.bf16 %v96_v26 }
   0xb   :  { %1182 = vmatpush3.bf16.msra.mxu0 %v1316_v6  ;;  %1299 = vmatpush3.bf16.msra.mxu1 %v1316_v6 }
   0xc   :  { %1183 = vmatprep.subr.bf16.mxu0 %v1317_v7  ;;  %1292 = vmatprep.subr.bf16.mxu1 %v1317_v7 }
   0xe   :  { %587 = vperm.xlu1 %1310, %v501_v27   ;;  %582 = vperm.xlu0 %1309, %v500_v28  }
   0xf   :  { %1184 = vmatpush3.bf16.msra.mxu0 %v1318_v8  ;;  %1300 = vmatpush3.bf16.msra.mxu1 %v1318_v8 }
  0x10   :  { %1185 = vmatprep.subr.bf16.mxu0 %v1319_v9  ;;  %1293 = vmatprep.subr.bf16.mxu1 %v1319_v9 }
  0x13   :  { %1186 = vmatpush3.bf16.msra.mxu0 %v1320_v10  ;;  %1301 = vmatpush3.bf16.msra.mxu1 %v1320_v10 }
  0x14   :  { %1187 = vmatprep.subr.bf16.mxu0 %v1321_v11  ;;  %1294 = vmatprep.subr.bf16.mxu1 %v1321_v11 }
  0x17   :  { %1188 = vmatpush3.bf16.msra.mxu0 %v1322_v16  ;;  %1302 = vmatpush3.bf16.msra.mxu1 %v1322_v16 }
  0x18   :  { %1189 = vmatprep.subr.bf16.mxu0 %v1323_v19  ;;  %1295 = vmatprep.subr.bf16.mxu1 %v1323_v19 }
  0x1b   :  { %1190 = vmatpush3.bf16.msra.mxu0 %v1324_v20  ;;  %1303 = vmatpush3.bf16.msra.mxu1 %v1324_v20 }
  0x1c   :  { %1191 = vmatprep.subr.bf16.mxu0 %v1325_v23  ;;  %1296 = vmatprep.subr.bf16.mxu1 %v1325_v23 }
  0x1f   :  { %1192 = vmatpush3.bf16.msra.mxu0 %v1326_v24  ;;  %1304 = vmatpush3.bf16.msra.mxu1 %v1326_v24 }
  0x20   :  { %9 = vsyncpa [#allocation4], 0  ;;  %v503_v33 = vld [vmem:[%s1662_s2 + $0x38] sm:$0xff]  ;;  %v502_v34 = vld [vmem:[%s1662_s2 + $0x30] sm:$0xff]  ;;  %v106_v39 = vunpack.c.h.s8.bf16 %v88_v25  ;;  %v122_v40 = vunpack.c.h.s8.bf16 %v96_v26 }
  0x21   :  { %v91_v35 = vld [vmem:[%s1660_s0 + $0x18] sm:$0xff]  ;;  %597 = vperm.xlu1 %1310, %v503_v33   ;;  %592 = vperm.xlu0 %1309, %v502_v34   ;;  %v505_v37 = vld [vmem:[%s1662_s2 + $0x48] sm:$0xff]  ;;  %v504_v38 = vld [vmem:[%s1662_s2 + $0x40] sm:$0xff] }
  0x22   :  { %301 = vmatmul.mubr.bf16.vlgmr.msra.gmra.mrb[0].mxu0 %v104_v29  ;;  %365 = vmatmul.mubr.bf16.vlgmr.msra.gmra.mrb[0].mxu1 %v120_v30  ;;  %v99_v36 = vld [vmem:[%s1660_s0 + $0x58] sm:$0xff]  ;;  %v109_v41 = vunpack.c.l.s8.bf16 %v91_v35  ;;  %v506_v44 = vld [vmem:[%s1662_s2 + $0x50] sm:$0xff]  ;;  %v509_v47 = vld [vmem:[%s1662_s2 + $0x68] sm:$0xff]  ;;  %v111_v51 = vunpack.c.h.s8.bf16 %v91_v35 }
  0x23   :  { %308 = vmatprep.mubr.bf16.mxu0 %v107_v31  ;;  %372 = vmatprep.mubr.bf16.mxu1 %v123_v32  ;;  %v125_v42 = vunpack.c.l.s8.bf16 %v99_v36  ;;  %v507_v43 = vld [vmem:[%s1662_s2 + $0x58] sm:$0xff]  ;;  %v90_v45 = vld [vmem:[%s1660_s0 + $0x10] sm:$0xff]  ;;  %v508_v48 = vld [vmem:[%s1662_s2 + $0x60] sm:$0xff]  ;;  %v127_v52 = vunpack.c.h.s8.bf16 %v99_v36 }
  0x24   :  { %v98_v46 = vld [vmem:[%s1660_s0 + $0x50] sm:$0xff]  ;;  %v108_v49 = vunpack.c.l.s8.bf16 %v90_v45  ;;  %v511_v53 = vld [vmem:[%s1662_s2 + $0x78] sm:$0xff]  ;;  %v93_v55 = vld [vmem:[%s1660_s0 + $0x28] sm:$0xff]  ;;  %v110_v59 = vunpack.c.h.s8.bf16 %v90_v45 }
  0x25   :  { %607 = vperm.xlu1 %1310, %v505_v37   ;;  %602 = vperm.xlu0 %1309, %v504_v38   ;;  %v124_v50 = vunpack.c.l.s8.bf16 %v98_v46  ;;  %v510_v54 = vld [vmem:[%s1662_s2 + $0x70] sm:$0xff]  ;;  %v101_v56 = vld [vmem:[%s1660_s0 + $0x68] sm:$0xff]  ;;  %v512_v58 = vld [vmem:[%s1662_s2 + $0x80] sm:$0xff]  ;;  %v126_v60 = vunpack.c.h.s8.bf16 %v98_v46  ;;  %v113_v61 = vunpack.c.l.s8.bf16 %v93_v55  ;;  %v115_v7 = vunpack.c.h.s8.bf16 %v93_v55 }
  0x26   :  { %v513_v57 = vld [vmem:[%s1662_s2 + $0x88] sm:$0xff]  ;;  %v129_v62 = vunpack.c.l.s8.bf16 %v101_v56  ;;  %v515_v63 = vld [vmem:[%s1662_s2 + $0x98] sm:$0xff]  ;;  %v514_v0 = vld [vmem:[%s1662_s2 + $0x90] sm:$0xff]  ;;  %v131_v8 = vunpack.c.h.s8.bf16 %v101_v56 }
  0x27   :  { %v92_v1 = vld [vmem:[%s1660_s0 + $0x20] sm:$0xff]  ;;  %v517_v3 = vld [vmem:[%s1662_s2 + $0xa8] sm:$0xff]  ;;  %v519_v9 = vld [vmem:[%s1662_s2 + $0xb8] sm:$0xff] }
  0x28   :  { %v100_v2 = vld [vmem:[%s1660_s0 + $0x60] sm:$0xff]  ;;  %v112_v5 = vunpack.c.l.s8.bf16 %v92_v1  ;;  %v518_v10 = vld [vmem:[%s1662_s2 + $0xb0] sm:$0xff]  ;;  %v95_v11 = vld [vmem:[%s1660_s0 + $0x38] sm:$0xff]  ;;  %v114_v15 = vunpack.c.h.s8.bf16 %v92_v1 }
  0x29   :  { %617 = vperm.xlu1 %1310, %v507_v43   ;;  %612 = vperm.xlu0 %1309, %v506_v44   ;;  %v516_v4 = vld [vmem:[%s1662_s2 + $0xa0] sm:$0xff]  ;;  %v128_v6 = vunpack.c.l.s8.bf16 %v100_v2  ;;  %v103_v12 = vld [vmem:[%s1660_s0 + $0x78] sm:$0xff]  ;;  %v521_v13 = vld [vmem:[%s1662_s2 + $0xc8] sm:$0xff]  ;;  %v130_v16 = vunpack.c.h.s8.bf16 %v100_v2  ;;  %v117_v17 = vunpack.c.l.s8.bf16 %v95_v11  ;;  %v119_v27 = vunpack.c.h.s8.bf16 %v95_v11 }
  0x2a   :  { %309 = vmatmul.mubr.bf16.gmra.mrb[4].mxu0 %v106_v39  ;;  %373 = vmatmul.mubr.bf16.gmra.mrb[4].mxu1 %v122_v40  ;;  %v520_v14 = vld [vmem:[%s1662_s2 + $0xc0] sm:$0xff]  ;;  %v133_v18 = vunpack.c.l.s8.bf16 %v103_v12  ;;  %v523_v19 = vld [vmem:[%s1662_s2 + $0xd8] sm:$0xff]  ;;  %v522_v20 = vld [vmem:[%s1662_s2 + $0xd0] sm:$0xff]  ;;  %v135_v28 = vunpack.c.h.s8.bf16 %v103_v12 }
  0x2b   :  { %316 = vmatprep.mubr.bf16.mxu0 %v109_v41  ;;  %380 = vmatprep.mubr.bf16.mxu1 %v125_v42  ;;  %v94_v21 = vld [vmem:[%s1660_s0 + $0x30] sm:$0xff]  ;;  %v525_v23 = vld [vmem:[%s1662_s2 + $0xe8] sm:$0xff]  ;;  %v524_v24 = vld [vmem:[%s1662_s2 + $0xe0] sm:$0xff] }
  0x2c   :  { %v102_v22 = vld [vmem:[%s1660_s0 + $0x70] sm:$0xff]  ;;  %v116_v25 = vunpack.c.l.s8.bf16 %v94_v21  ;;  %v527_v29 = vld [vmem:[%s1662_s2 + $0xf8] sm:$0xff]  ;;  %v118_v31 = vunpack.c.h.s8.bf16 %v94_v21 }
  0x2d   :  { %627 = vperm.xlu1 %1310, %v509_v47   ;;  %622 = vperm.xlu0 %1309, %v508_v48   ;;  %v132_v26 = vunpack.c.l.s8.bf16 %v102_v22  ;;  %v526_v30 = vld [vmem:[%s1662_s2 + $0xf0] sm:$0xff]  ;;  %v134_v32 = vunpack.c.h.s8.bf16 %v102_v22 }
  0x31   :  { %637 = vperm.xlu1 %1310, %v511_v53   ;;  %632 = vperm.xlu0 %1309, %v510_v54  }
  0x32   :  { %317 = vmatmul.mubr.bf16.gmra.mrb[8].mxu0 %v108_v49  ;;  %381 = vmatmul.mubr.bf16.gmra.mrb[8].mxu1 %v124_v50 }
  0x33   :  { %324 = vmatprep.mubr.bf16.mxu0 %v111_v51  ;;  %388 = vmatprep.mubr.bf16.mxu1 %v127_v52 }
  0x35   :  { %647 = vperm.xlu1 %1310, %v513_v57   ;;  %642 = vperm.xlu0 %1309, %v512_v58   ;;  %v1601_v58 = vld [vmem:[%s1663_s3] ss:$0 sm:$0xff]  ;;  %s1352_s3 = smov [#allocation3]  }
  0x36   :  { %s988_s10 = sshll.u32 %s1352_s3, 4  ;;  %s989_s10 = int_to_ptr.vmem [resolvable:$true] %s988_s10 }
  0x37   :  { %s1327_s11 = scalar_lea.vmem %s989_s10, 2048  ;;  %p1332_p1 = scmp.lt.s32.totalorder %s989_s10, %s989_s10 }
  0x38   :  { %p1328_p0 = scmp.ne.s32.totalorder %s989_s10, %s1327_s11  ;;  %p1333_p2 = scmp.lt.s32.totalorder %s1327_s11, %s1327_s11 }
  0x39   :  { %657 = vperm.xlu1 %1310, %v515_v63   ;;  %652 = vperm.xlu0 %1309, %v514_v0  }
  0x3a   :  { %325 = vmatmul.mubr.bf16.gmra.mrb[12].mxu0 %v110_v59  ;;  %389 = vmatmul.mubr.bf16.gmra.mrb[12].mxu1 %v126_v60  ;;  %p1334_p3 = por %p1333_p2, %p1332_p1 }
  0x3b   :  { %332 = vmatprep.mubr.bf16.mxu0 %v113_v61  ;;  %396 = vmatprep.mubr.bf16.mxu1 %v129_v62 }
  0x3c   :  { %p1335_p4 = pnand %p1334_p3, %p1328_p0 }
  0x3d   :  { %667 = vperm.xlu1 %1310, %v517_v3   ;;  %662 = vperm.xlu0 %1309, %v516_v4  }
  0x41   :  { %677 = vperm.xlu1 %1310, %v519_v9   ;;  %672 = vperm.xlu0 %1309, %v518_v10  }
  0x42   :  { %333 = vmatmul.mubr.bf16.gmra.mrb[16].mxu0 %v112_v5  ;;  %397 = vmatmul.mubr.bf16.gmra.mrb[16].mxu1 %v128_v6 }
  0x43   :  { %340 = vmatprep.mubr.bf16.mxu0 %v115_v7  ;;  %404 = vmatprep.mubr.bf16.mxu1 %v131_v8 }
  0x45   :  { %687 = vperm.xlu1 %1310, %v521_v13   ;;  %682 = vperm.xlu0 %1309, %v520_v14  }
  0x49   :  { %697 = vperm.xlu1 %1310, %v523_v19   ;;  %692 = vperm.xlu0 %1309, %v522_v20  }
  0x4a   :  { %341 = vmatmul.mubr.bf16.gmra.mrb[20].mxu0 %v114_v15  ;;  %405 = vmatmul.mubr.bf16.gmra.mrb[20].mxu1 %v130_v16 }
  0x4b   :  { %348 = vmatprep.mubr.bf16.mxu0 %v117_v17  ;;  %412 = vmatprep.mubr.bf16.mxu1 %v133_v18 }
  0x4d   :  { %707 = vperm.xlu1 %1310, %v525_v23   ;;  %702 = vperm.xlu0 %1309, %v524_v24  }
  0x51   :  { %717 = vperm.xlu1 %1310, %v527_v29   ;;  %712 = vperm.xlu0 %1309, %v526_v30  }
  0x52   :  { %349 = vmatmul.mubr.bf16.gmra.mrb[24].mxu0 %v116_v25  ;;  %413 = vmatmul.mubr.bf16.gmra.mrb[24].mxu1 %v132_v26 }
  0x53   :  { %356 = vmatprep.mubr.bf16.mxu0 %v119_v27  ;;  %420 = vmatprep.mubr.bf16.mxu1 %v135_v28 }
  0x5a   :  { %357 = vmatmul.mubr.bf16.gmra.mrb[28].mxu0 %v118_v31  ;;  %421 = vmatmul.mubr.bf16.gmra.mrb[28].mxu1 %v134_v32 }
  0x85   :  { %v563_v33 = vpop.permute.xlu0 %562  ;;  %v573_v34 = vpop.permute.xlu1 %572 }
  0x89   :  { %v568_v35 = vpop.permute.xlu0 %567  ;;  %v1572_v36 = vpop.permute.xlu1 %577 }
  0x8d   :  { %v1574_v37 = vpop.permute.xlu0 %582  ;;  %v1576_v38 = vpop.permute.xlu1 %587 }
  0xa0   :  { %v1578_v39 = vpop.permute.xlu0 %592  ;;  %v1580_v40 = vpop.permute.xlu1 %597 }
  0xa4   :  { %v1582_v41 = vpop.permute.xlu0 %602  ;;  %v1584_v42 = vpop.permute.xlu1 %607 }
  0xa8   :  { %v1586_v43 = vpop.permute.xlu0 %612  ;;  %v1588_v44 = vpop.permute.xlu1 %617 }
  0xac   :  { %v1590_v45 = vpop.permute.xlu0 %622  ;;  %v1592_v46 = vpop.permute.xlu1 %627 }
  0xb0   :  { %v1594_v47 = vpop.permute.xlu0 %632  ;;  %v1596_v48 = vpop.permute.xlu1 %637 }
  0xb4   :  { %v643_v49 = vpop.permute.xlu0 %642  ;;  %v648_v1 = vpop.permute.xlu1 %647 }
  0xb8   :  { %v653_v6 = vpop.permute.xlu0 %652  ;;  %v658_v29 = vpop.permute.xlu1 %657 }
  0xbc   :  { %v663_v30 = vpop.permute.xlu0 %662 }
  0xf5   :  { %v1193_v50 = vpop.f32.mrb[0].mxu0  ;;  %v1241_v51 = vpop.f32.mrb[0].mxu1 }
  0xf6   :  { %v1194_v52 = vpop.f32.mrb[1].mxu0  ;;  %v1242_v53 = vpop.f32.mrb[1].mxu1 }
  0xf7   :  { %v1195_v54 = vadd.f32 %v1194_v52, %v1193_v50  ;;  %v1243_v55 = vadd.f32 %v1242_v53, %v1241_v51  ;;  %v1196_v56 = vpop.f32.mrb[2].mxu0  ;;  %v1244_v57 = vpop.f32.mrb[2].mxu1 }
  0xf8   :  { %v1197_v59 = vpop.f32.mrb[3].mxu0  ;;  %v1245_v60 = vpop.f32.mrb[3].mxu1 }
  0xf9   :  { %v720_v61 = vmul.f32 %v1195_v54, %v563_v33  ;;  %v736_v62 = vmul.f32 %v1243_v55, %v643_v49  ;;  %v1198_v63 = vadd.f32 %v1197_v59, %v1196_v56  ;;  %v1246_v0 = vadd.f32 %v1245_v60, %v1244_v57 }
  0xfb   :  { %v759_v2 = vadd.f32 %v1601_v58, %v720_v61  ;;  %v775_v3 = vadd.f32 %v1601_v58, %v736_v62  ;;  %v721_v4 = vmul.f32 %v1198_v63, %v568_v35  ;;  %v737_v5 = vmul.f32 %v1246_v0, %v648_v1 }
  0xfd   :  { %v760_v7 = vadd.f32 %v1601_v58, %v721_v4  ;;  %v776_v8 = vadd.f32 %v1601_v58, %v737_v5  ;;  %v1199_v9 = vpop.f32.mrb[4].mxu0  ;;  %v1247_v10 = vpop.f32.mrb[4].mxu1  ;;  %v791_v11 = vmax.f32 %v759_v2, 0.0  ;;  %v807_v12 = vmax.f32 %v775_v3, 0.0 }
  0xfe   :  { %v1200_v13 = vpop.f32.mrb[5].mxu0  ;;  %v1248_v14 = vpop.f32.mrb[5].mxu1 }
  0xff   :  { %v792_v15 = vmax.f32 %v760_v7, 0.0  ;;  %v808_v16 = vmax.f32 %v776_v8, 0.0  ;;  %v1201_v17 = vadd.f32 %v1200_v13, %v1199_v9  ;;  %v1249_v18 = vadd.f32 %v1248_v14, %v1247_v10  ;;  %v1202_v19 = vpop.f32.mrb[6].mxu0  ;;  %v1250_v20 = vpop.f32.mrb[6].mxu1 }
 0x100   :  { %v1203_v21 = vpop.f32.mrb[7].mxu0  ;;  %v1251_v22 = vpop.f32.mrb[7].mxu1 }
 0x101   :  { %v1085_v23 = vpack.c.bf16 %v792_v15, %v791_v11  ;;  %v1125_v24 = vpack.c.bf16 %v808_v16, %v807_v12  ;;  %v722_v25 = vmul.f32 %v1201_v17, %v573_v34  ;;  %v738_v26 = vmul.f32 %v1249_v18, %v653_v6  ;;  %v668_v4 = vpop.permute.xlu1 %667  ;;  %v673_v11 = vpop.permute.xlu0 %672 }
 0x102   :  { %v1204_v27 = vadd.f32 %v1203_v21, %v1202_v19  ;;  %v1252_v28 = vadd.f32 %v1251_v22, %v1250_v20 }
 0x103   :  { %1086 = vst [vmem:[#allocation3] sm:$0xff] %v1085_v23   ;;  %1169 = vst [vmem:[#allocation3 + $0x40] sm:$0xff] %v1125_v24   ;;  %v761_v31 = vadd.f32 %v1601_v58, %v722_v25  ;;  %v777_v32 = vadd.f32 %v1601_v58, %v738_v26 }
 0x104   :  { %v723_v33 = vmul.f32 %v1204_v27, %v1572_v36  ;;  %v739_v35 = vmul.f32 %v1252_v28, %v658_v29 }
 0x105   :  { %v1205_v49 = vpop.f32.mrb[8].mxu0  ;;  %v1253_v50 = vpop.f32.mrb[8].mxu1  ;;  %v793_v59 = vmax.f32 %v761_v31, 0.0  ;;  %v809_v60 = vmax.f32 %v777_v32, 0.0 }
 0x106   :  { %v762_v51 = vadd.f32 %v1601_v58, %v723_v33  ;;  %v778_v34 = vadd.f32 %v1601_v58, %v739_v35  ;;  %v1206_v52 = vpop.f32.mrb[9].mxu0  ;;  %v1254_v53 = vpop.f32.mrb[9].mxu1 }
 0x107   :  { %v1207_v54 = vadd.f32 %v1206_v52, %v1205_v49  ;;  %v1255_v55 = vadd.f32 %v1254_v53, %v1253_v50  ;;  %v1208_v56 = vpop.f32.mrb[10].mxu0  ;;  %v1256_v57 = vpop.f32.mrb[10].mxu1 }
 0x108   :  { %v794_v61 = vmax.f32 %v762_v51, 0.0  ;;  %v810_v62 = vmax.f32 %v778_v34, 0.0  ;;  %v1209_v63 = vpop.f32.mrb[11].mxu0  ;;  %v1257_v0 = vpop.f32.mrb[11].mxu1 }
 0x109   :  { %v724_v36 = vmul.f32 %v1207_v54, %v1574_v37  ;;  %v740_v1 = vmul.f32 %v1255_v55, %v663_v30  ;;  %v1210_v2 = vadd.f32 %v1209_v63, %v1208_v56  ;;  %v1258_v3 = vadd.f32 %v1257_v0, %v1256_v57  ;;  %v678_v32 = vpop.permute.xlu1 %677  ;;  %v683_v33 = vpop.permute.xlu0 %682 }
 0x10a   :  { %v1090_v5 = vpack.c.bf16 %v794_v61, %v793_v59  ;;  %v1130_v6 = vpack.c.bf16 %v810_v62, %v809_v60 }
 0x10b   :  { %v763_v7 = vadd.f32 %v1601_v58, %v724_v36  ;;  %v779_v8 = vadd.f32 %v1601_v58, %v740_v1  ;;  %v725_v9 = vmul.f32 %v1210_v2, %v1576_v38  ;;  %v741_v10 = vmul.f32 %v1258_v3, %v668_v4 }
 0x10c   :  { %1162 = vst [vmem:[#allocation3 + $0x8] sm:$0xff] %v1090_v5   ;;  %1170 = vst [vmem:[#allocation3 + $0x48] sm:$0xff] %v1130_v6  }
 0x10d   :  { %v764_v12 = vadd.f32 %v1601_v58, %v725_v9  ;;  %v780_v37 = vadd.f32 %v1601_v58, %v741_v10  ;;  %v1211_v13 = vpop.f32.mrb[12].mxu0  ;;  %v1259_v14 = vpop.f32.mrb[12].mxu1  ;;  %v795_v15 = vmax.f32 %v763_v7, 0.0  ;;  %v811_v16 = vmax.f32 %v779_v8, 0.0 }
 0x10e   :  { %v1212_v17 = vpop.f32.mrb[13].mxu0  ;;  %v1260_v18 = vpop.f32.mrb[13].mxu1 }
 0x10f   :  { %v796_v19 = vmax.f32 %v764_v12, 0.0  ;;  %v812_v20 = vmax.f32 %v780_v37, 0.0  ;;  %v1213_v21 = vadd.f32 %v1212_v17, %v1211_v13  ;;  %v1261_v22 = vadd.f32 %v1260_v18, %v1259_v14  ;;  %v1214_v23 = vpop.f32.mrb[14].mxu0  ;;  %v1262_v38 = vpop.f32.mrb[14].mxu1 }
 0x110   :  { %v1215_v24 = vpop.f32.mrb[15].mxu0  ;;  %v1263_v25 = vpop.f32.mrb[15].mxu1 }
 0x111   :  { %v1095_v26 = vpack.c.bf16 %v796_v19, %v795_v15  ;;  %v1135_v27 = vpack.c.bf16 %v812_v20, %v811_v16  ;;  %v726_v28 = vmul.f32 %v1213_v21, %v1578_v39  ;;  %v742_v29 = vmul.f32 %v1261_v22, %v673_v11  ;;  %v688_v5 = vpop.permute.xlu1 %687  ;;  %v693_v12 = vpop.permute.xlu0 %692 }
 0x112   :  { %v1216_v30 = vadd.f32 %v1215_v24, %v1214_v23  ;;  %v1264_v31 = vadd.f32 %v1263_v25, %v1262_v38 }
 0x113   :  { %1163 = vst [vmem:[#allocation3 + $0x10] sm:$0xff] %v1095_v26   ;;  %1171 = vst [vmem:[#allocation3 + $0x50] sm:$0xff] %v1135_v27   ;;  %v765_v35 = vadd.f32 %v1601_v58, %v726_v28  ;;  %v781_v49 = vadd.f32 %v1601_v58, %v742_v29 }
 0x114   :  { %v727_v50 = vmul.f32 %v1216_v30, %v1580_v40  ;;  %v743_v51 = vmul.f32 %v1264_v31, %v678_v32 }
 0x115   :  { %v1217_v34 = vpop.f32.mrb[16].mxu0  ;;  %v1265_v52 = vpop.f32.mrb[16].mxu1  ;;  %v797_v61 = vmax.f32 %v765_v35, 0.0  ;;  %v813_v62 = vmax.f32 %v781_v49, 0.0 }
 0x116   :  { %v766_v53 = vadd.f32 %v1601_v58, %v727_v50  ;;  %v782_v39 = vadd.f32 %v1601_v58, %v743_v51  ;;  %v1218_v54 = vpop.f32.mrb[17].mxu0  ;;  %v1266_v55 = vpop.f32.mrb[17].mxu1 }
 0x117   :  { %v1219_v56 = vadd.f32 %v1218_v54, %v1217_v34  ;;  %v1267_v57 = vadd.f32 %v1266_v55, %v1265_v52  ;;  %v1220_v59 = vpop.f32.mrb[18].mxu0  ;;  %v1268_v60 = vpop.f32.mrb[18].mxu1 }
 0x118   :  { %v798_v63 = vmax.f32 %v766_v53, 0.0  ;;  %v814_v0 = vmax.f32 %v782_v39, 0.0  ;;  %v1221_v36 = vpop.f32.mrb[19].mxu0  ;;  %v1269_v1 = vpop.f32.mrb[19].mxu1 }
 0x119   :  { %v728_v40 = vmul.f32 %v1219_v56, %v1582_v41  ;;  %v744_v2 = vmul.f32 %v1267_v57, %v683_v33  ;;  %v1222_v3 = vadd.f32 %v1221_v36, %v1220_v59  ;;  %v1270_v4 = vadd.f32 %v1269_v1, %v1268_v60  ;;  %v698_v31 = vpop.permute.xlu1 %697  ;;  %v703_v32 = vpop.permute.xlu0 %702 }
 0x11a   :  { %v1100_v6 = vpack.c.bf16 %v798_v63, %v797_v61  ;;  %v1140_v7 = vpack.c.bf16 %v814_v0, %v813_v62 }
 0x11b   :  { %v767_v8 = vadd.f32 %v1601_v58, %v728_v40  ;;  %v783_v9 = vadd.f32 %v1601_v58, %v744_v2  ;;  %v729_v10 = vmul.f32 %v1222_v3, %v1584_v42  ;;  %v745_v11 = vmul.f32 %v1270_v4, %v688_v5 }
 0x11c   :  { %1164 = vst [vmem:[#allocation3 + $0x18] sm:$0xff] %v1100_v6   ;;  %1172 = vst [vmem:[#allocation3 + $0x58] sm:$0xff] %v1140_v7  }
 0x11d   :  { %v768_v37 = vadd.f32 %v1601_v58, %v729_v10  ;;  %v784_v41 = vadd.f32 %v1601_v58, %v745_v11  ;;  %v1223_v13 = vpop.f32.mrb[20].mxu0  ;;  %v1271_v14 = vpop.f32.mrb[20].mxu1  ;;  %v799_v15 = vmax.f32 %v767_v8, 0.0  ;;  %v815_v16 = vmax.f32 %v783_v9, 0.0 }
 0x11e   :  { %v1224_v17 = vpop.f32.mrb[21].mxu0  ;;  %v1272_v18 = vpop.f32.mrb[21].mxu1 }
 0x11f   :  { %v800_v19 = vmax.f32 %v768_v37, 0.0  ;;  %v816_v20 = vmax.f32 %v784_v41, 0.0  ;;  %v1225_v21 = vadd.f32 %v1224_v17, %v1223_v13  ;;  %v1273_v22 = vadd.f32 %v1272_v18, %v1271_v14  ;;  %v1226_v23 = vpop.f32.mrb[22].mxu0  ;;  %v1274_v42 = vpop.f32.mrb[22].mxu1 }
 0x120   :  { %v1227_v38 = vpop.f32.mrb[23].mxu0  ;;  %v1275_v24 = vpop.f32.mrb[23].mxu1 }
 0x121   :  { %v1105_v25 = vpack.c.bf16 %v800_v19, %v799_v15  ;;  %v1145_v26 = vpack.c.bf16 %v816_v20, %v815_v16  ;;  %v730_v27 = vmul.f32 %v1225_v21, %v1586_v43  ;;  %v746_v28 = vmul.f32 %v1273_v22, %v693_v12  ;;  %v708_v2 = vpop.permute.xlu1 %707  ;;  %v713_v9 = vpop.permute.xlu0 %712 }
 0x122   :  { %v1228_v29 = vadd.f32 %v1227_v38, %v1226_v23  ;;  %v1276_v30 = vadd.f32 %v1275_v24, %v1274_v42 }
 0x123   :  { %1165 = vst [vmem:[#allocation3 + $0x20] sm:$0xff] %v1105_v25   ;;  %1173 = vst [vmem:[#allocation3 + $0x60] sm:$0xff] %v1145_v26   ;;  %v769_v33 = vadd.f32 %v1601_v58, %v730_v27  ;;  %v785_v35 = vadd.f32 %v1601_v58, %v746_v28 }
 0x124   :  { %v731_v49 = vmul.f32 %v1228_v29, %v1588_v44  ;;  %v747_v50 = vmul.f32 %v1276_v30, %v698_v31 }
 0x125   :  { %v1229_v51 = vpop.f32.mrb[24].mxu0  ;;  %v1277_v34 = vpop.f32.mrb[24].mxu1  ;;  %v801_v59 = vmax.f32 %v769_v33, 0.0  ;;  %v817_v60 = vmax.f32 %v785_v35, 0.0 }
 0x126   :  { %v770_v52 = vadd.f32 %v1601_v58, %v731_v49  ;;  %v786_v43 = vadd.f32 %v1601_v58, %v747_v50  ;;  %v1230_v53 = vpop.f32.mrb[25].mxu0  ;;  %v1278_v39 = vpop.f32.mrb[25].mxu1 }
 0x127   :  { %v1231_v54 = vadd.f32 %v1230_v53, %v1229_v51  ;;  %v1279_v55 = vadd.f32 %v1278_v39, %v1277_v34  ;;  %v1232_v56 = vpop.f32.mrb[26].mxu0  ;;  %v1280_v57 = vpop.f32.mrb[26].mxu1 }
 0x128   :  { %v802_v61 = vmax.f32 %v770_v52, 0.0  ;;  %v818_v62 = vmax.f32 %v786_v43, 0.0  ;;  %v1233_v63 = vpop.f32.mrb[27].mxu0  ;;  %v1281_v0 = vpop.f32.mrb[27].mxu1 }
 0x129   :  { %v732_v44 = vmul.f32 %v1231_v54, %v1590_v45  ;;  %v748_v36 = vmul.f32 %v1279_v55, %v703_v32  ;;  %v1234_v1 = vadd.f32 %v1233_v63, %v1232_v56  ;;  %v1282_v40 = vadd.f32 %v1281_v0, %v1280_v57  ;;  %v718_v26 = vpop.permute.xlu1 %717 }
 0x12a   :  { %v1110_v3 = vpack.c.bf16 %v802_v61, %v801_v59  ;;  %v1150_v4 = vpack.c.bf16 %v818_v62, %v817_v60 }
 0x12b   :  { %v771_v5 = vadd.f32 %v1601_v58, %v732_v44  ;;  %v787_v6 = vadd.f32 %v1601_v58, %v748_v36  ;;  %v733_v7 = vmul.f32 %v1234_v1, %v1592_v46  ;;  %v749_v8 = vmul.f32 %v1282_v40, %v708_v2 }
 0x12c   :  { %1166 = vst [vmem:[#allocation3 + $0x28] sm:$0xff] %v1110_v3   ;;  %1174 = vst [vmem:[#allocation3 + $0x68] sm:$0xff] %v1150_v4  }
 0x12d   :  { %v772_v10 = vadd.f32 %v1601_v58, %v733_v7  ;;  %v788_v45 = vadd.f32 %v1601_v58, %v749_v8  ;;  %v1235_v11 = vpop.f32.mrb[28].mxu0  ;;  %v1283_v12 = vpop.f32.mrb[28].mxu1  ;;  %v803_v37 = vmax.f32 %v771_v5, 0.0  ;;  %v819_v41 = vmax.f32 %v787_v6, 0.0 }
 0x12e   :  { %v1236_v13 = vpop.f32.mrb[29].mxu0  ;;  %v1284_v14 = vpop.f32.mrb[29].mxu1 }
 0x12f   :  { %v804_v15 = vmax.f32 %v772_v10, 0.0  ;;  %v820_v16 = vmax.f32 %v788_v45, 0.0  ;;  %v1237_v17 = vadd.f32 %v1236_v13, %v1235_v11  ;;  %v1285_v18 = vadd.f32 %v1284_v14, %v1283_v12  ;;  %v1238_v19 = vpop.f32.mrb[30].mxu0  ;;  %v1286_v46 = vpop.f32.mrb[30].mxu1 }
 0x130   :  { %v1239_v20 = vpop.f32.mrb[31].mxu0  ;;  %v1287_v21 = vpop.f32.mrb[31].mxu1 }
 0x131   :  { %v1115_v22 = vpack.c.bf16 %v804_v15, %v803_v37  ;;  %v1155_v23 = vpack.c.bf16 %v820_v16, %v819_v41  ;;  %v734_v42 = vmul.f32 %v1237_v17, %v1594_v47  ;;  %v750_v38 = vmul.f32 %v1285_v18, %v713_v9 }
 0x132   :  { %v1240_v24 = vadd.f32 %v1239_v20, %v1238_v19  ;;  %v1288_v25 = vadd.f32 %v1287_v21, %v1286_v46 }
 0x133   :  { %1167 = vst [vmem:[#allocation3 + $0x30] sm:$0xff] %v1115_v22   ;;  %1175 = vst [vmem:[#allocation3 + $0x70] sm:$0xff] %v1155_v23   ;;  %v773_v27 = vadd.f32 %v1601_v58, %v734_v42  ;;  %v789_v28 = vadd.f32 %v1601_v58, %v750_v38 }
 0x134   :  { %v735_v29 = vmul.f32 %v1240_v24, %v1596_v48  ;;  %v751_v30 = vmul.f32 %v1288_v25, %v718_v26 }
 0x135   :  { %v805_v47 = vmax.f32 %v773_v27, 0.0  ;;  %v821_v33 = vmax.f32 %v789_v28, 0.0 }
 0x136   :  { %v774_v31 = vadd.f32 %v1601_v58, %v735_v29  ;;  %v790_v32 = vadd.f32 %v1601_v58, %v751_v30 }
 0x138   :  { %v806_v35 = vmax.f32 %v774_v31, 0.0  ;;  %v822_v49 = vmax.f32 %v790_v32, 0.0 }
 0x13a   :  { %v1120_v50 = vpack.c.bf16 %v806_v35, %v805_v47  ;;  %v1160_v51 = vpack.c.bf16 %v822_v49, %v821_v33 }
 0x13c   :  { %1168 = vst [vmem:[#allocation3 + $0x38] sm:$0xff] %v1120_v50   ;;  %1176 = vst [vmem:[#allocation3 + $0x78] sm:$0xff] %v1160_v51  }
 0x13d   :  { %1338 = shalt.err (!%p1335_p4)
}
 0x13e   :  { %s1339_s14 = scalar_lea.hbm %s1664_s4, 2048 }
 0x13f   :  { %p1340_p5 = scmp.ne.s32.totalorder %s1664_s4, %s1339_s14  ;;  %p1343_p6 = scmp.lt.u32.totalorder %s1339_s14, %s1664_s4 }
 0x141   :  { %p1345_p7 = pnand %p1343_p6, %p1340_p5 }
 0x143   :  { %1348 = shalt.err (!%p1345_p7)
}
 0x144   :  { %s1353_s18 = smov 64   ;;  %s1354_s19 = smov 4  }
 0x145   :  { %994 = dma.vmem_to_hbm [thread:$0]  %s989_s10, 2048, %s1664_s4, [#allocation4], %s1353_s18, %s1353_s18, %s1354_s19  }
 0x146   :  { %1349 = dma.done.wait [#allocation4], 2048  }
 0x147   :  { %1350 = vsyncadd [#allocation4], 4294965248 }
 0x148   :  { %998 = vsyncpa [#allocation4], 1 }

</bundles_post_ra>
